<compile_context>
chip_gen: v5e
topology: v5e:2x2
jax: 0.10.0
libtpu: 0.0.40
codegen_flags: <defaults>
</compile_context>

<pallas_src>
import numpy as np
import jax
import jax.numpy as jnp
from jax.experimental import pallas as pl
from jax.experimental.pallas import tpu as pltpu


def _round_up(x, m):
    return ((x + m - 1) // m) * m


def _cdiv(a, b):
    return -(-a // b)


def make_embedder(input_dim,
                  max_freq_log2,
                  N_freqs,
                  log_sampling=True,
                  include_input=True,
                  N_anneal=100000,
                  N_anneal_min_freq=0,
                  use_annealing=True,
                  cos_via_phase_shift=True,
                  out_dtype=None,
                  vmem_budget_bytes=32 * 1024 * 1024,
                  max_block_rows=8192):
    """Returns (embed_fn, out_dim).  embed_fn(x, iteration) mirrors Embedder.forward."""

    # --- static setup (mirrors Embedder.__init__) ----------------------------
    if log_sampling:
        freq_bands = 2.0 ** np.linspace(0.0, max_freq_log2, N_freqs)
    else:
        freq_bands = np.linspace(2.0 ** 0.0, 2.0 ** max_freq_log2, N_freqs)
    freq_bands = np.asarray(freq_bands, dtype=np.float64)

    D = int(input_dim)
    NF = int(N_freqs)
    G = (1 if include_input else 0) + 2 * NF          # feature groups
    out_dim = G * D
    id_lanes = D if include_input else 0

    # --- static per-output-lane tables (out_dim,) -----------------------------
    # lane l = g*D + d ; group order: [identity?, sin f0, cos f0, sin f1, ...]
    freq_lane = np.concatenate(
        [np.ones(id_lanes), np.repeat(freq_bands, 2 * D)]).astype(np.float32)
    sc_block = np.concatenate([np.ones(D), np.zeros(D)])          # sin lanes=1
    is_sin = np.concatenate([np.zeros(id_lanes), np.tile(sc_block, NF)]).astype(np.float32)
    is_cos = np.concatenate([np.zeros(id_lanes), np.tile(1.0 - sc_block, NF)]).astype(np.float32)
    is_id = np.concatenate([np.ones(id_lanes), np.zeros(2 * NF * D)]).astype(np.float32)
    phase_lane = (is_cos * (np.pi / 2.0)).astype(np.float32)
    freq_idx_lane = np.concatenate(
        [np.zeros(id_lanes, np.int32),
         np.repeat(np.arange(NF, dtype=np.int32), 2 * D)]).astype(np.int32)

    # --- annealing weights -> per-lane weight vector (iteration-dependent) ----
    def _lane_params(iteration):
        it = jnp.asarray(iteration, dtype=jnp.float32)
        alpha = (NF - N_anneal_min_freq) * it / float(N_anneal)
        idx = jnp.arange(NF, dtype=jnp.float32)
        if use_annealing:
            w_freq = (1.0 - jnp.cos(
                jnp.pi * jnp.clip(alpha - idx + N_anneal_min_freq, 0.0, 1.0))) * 0.5
        else:
            w_freq = jnp.ones((NF,), dtype=jnp.float32)
        w_lane = jnp.take(w_freq, jnp.asarray(freq_idx_lane))     # (out_dim,)
        if cos_via_phase_shift:
            rows = [freq_lane, phase_lane, is_id, w_lane * (is_sin + is_cos)]
        else:
            rows = [freq_lane, is_id, w_lane * is_sin, w_lane * is_cos]
        return jnp.stack([jnp.asarray(r, dtype=jnp.float32) for r in rows], axis=0)

    # --- Pallas kernels: fully fused, feature-last, pure elementwise ----------
    def kernel_phase(lp_ref, x_ref, o_ref):
        xr = x_ref[...].astype(jnp.float32)           # (tile, out_dim) replicated x
        xf = xr * lp_ref[0:1, :]                      # per-lane frequency scale
        val = jnp.sin(xf + lp_ref[1:2, :]) * lp_ref[3:4, :]   # sin & cos via phase
        if include_input:
            val = val + xf * lp_ref[2:3, :]           # identity lanes (freq == 1)
        o_ref[...] = val.astype(o_ref.dtype)

    def kernel_sincos(lp_ref, x_ref, o_ref):
        xr = x_ref[...].astype(jnp.float32)
        xf = xr * lp_ref[0:1, :]
        val = jnp.sin(xf) * lp_ref[2:3, :] + jnp.cos(xf) * lp_ref[3:4, :]
        if include_input:
            val = val + xf * lp_ref[1:2, :]
        o_ref[...] = val.astype(o_ref.dtype)

    kernel = kernel_phase if cos_via_phase_shift else kernel_sincos

    def embed(x, iteration):
        assert x.shape[-1] == input_dim
        lead = x.shape[:-1]
        n_rows = int(np.prod(lead)) if lead else 1
        odt = np.dtype(out_dtype) if out_dtype is not None else np.dtype(x.dtype)

        # --- tile-size from a VMEM budget (double-buffered in + out blocks) ---
        lane_pad = _round_up(out_dim, 128)            # physical lane footprint
        row_bytes = lane_pad * (np.dtype(x.dtype).itemsize + odt.itemsize)
        budget_rows = int(0.6 * vmem_budget_bytes) // (2 * row_bytes)
        tile = max(8, min(max_block_rows, (budget_rows // 8) * 8))

        n8 = _round_up(n_rows, 8)
        tile = min(tile, n8)
        if n8 >= 16 and tile >= n8:
            # >=2 grid blocks so both v7x TensorCores get work
            tile = _round_up(_cdiv(n8, 2), 8)
        num_blocks = _cdiv(n8, tile)
        n_pad = num_blocks * tile

        # --- input prep: leading reshape (free) + tiny row pad + lane tile ----
        x2 = x.reshape(n_rows, D)
        if n_pad != n_rows:
            x2 = jnp.pad(x2, ((0, n_pad - n_rows), (0, 0)))
        x_rep = jnp.tile(x2, (1, G))                  # (n_pad, out_dim): lane g*D+d = x[:, d]

        lp = _lane_params(iteration)                  # (4, out_dim) f32

        total = n_pad * out_dim
        cost = pl.CostEstimate(
            flops=int(5 * total),
            transcendentals=int((1 if cos_via_phase_shift else 2) * total),
            bytes_accessed=int(total * (np.dtype(x.dtype).itemsize + odt.itemsize)
                               + 4 * out_dim * 4),
        )

        out = pl.pallas_call(
            kernel,
            out_shape=jax.ShapeDtypeStruct((n_pad, out_dim), odt),
            grid=(num_blocks,),
            in_specs=[
                pl.BlockSpec((4, out_dim), lambda i: (0, 0)),       # lane params
                pl.BlockSpec((tile, out_dim), lambda i: (i, 0)),    # replicated x
            ],
            out_specs=pl.BlockSpec((tile, out_dim), lambda i: (i, 0)),
            compiler_params=pltpu.CompilerParams(
                dimension_semantics=("parallel",),
                vmem_limit_bytes=int(vmem_budget_bytes)),
            cost_estimate=cost,
        )(lp, x_rep)

        if n_pad != n_rows:
            out = out[:n_rows]                        # contiguous prefix slice (pad only)
        return out.reshape(*lead, out_dim)

    return embed, out_dim


def _reference_embed(x, iteration, input_dim, max_freq_log2, N_freqs,
                     N_anneal, N_anneal_min_freq, use_annealing, include_input):
    """Pure-numpy replica of Embedder.forward for correctness checking."""
    freq_bands = 2.0 ** np.linspace(0.0, max_freq_log2, N_freqs)
    out = []
    if include_input:
        out.append(np.asarray(x))
    alpha = (N_freqs - N_anneal_min_freq) * iteration / N_anneal
    for i in range(N_freqs):
        w = (1 - np.cos(np.pi * np.clip(alpha - i + N_anneal_min_freq, 0, 1))) / 2.0
        if not use_annealing:
            w = 1
        freq = freq_bands[i]
        out.append(np.sin(np.asarray(x) * freq) * w)
        out.append(np.cos(np.asarray(x) * freq) * w)
    return np.concatenate(out, axis=-1).astype(np.float32)


if __name__ == "__main__":
    # small, module-consistent config
    input_dim = 4
    max_freq_log2 = 3.0
    N_freqs = 4
    N_anneal = 100000
    N_anneal_min_freq = 0
    use_annealing = True
    include_input = True
    iteration = 50000

    embed_fn, out_dim = make_embedder(
        input_dim, max_freq_log2, N_freqs,
        log_sampling=True, include_input=include_input,
        N_anneal=N_anneal, N_anneal_min_freq=N_anneal_min_freq,
        use_annealing=use_annealing)

    key = jax.random.PRNGKey(0)
    x = jax.random.normal(key, (2, 8, input_dim), dtype=jnp.float32)

    out = jax.block_until_ready(embed_fn(x, iteration))
    assert out.shape == (2, 8, out_dim), out.shape
    ref = _reference_embed(np.asarray(x), iteration, input_dim, max_freq_log2,
                           N_freqs, N_anneal, N_anneal_min_freq,
                           use_annealing, include_input)
    np.testing.assert_allclose(np.asarray(out), ref, rtol=1e-5, atol=1e-5)

    # leading size not a multiple of 8 rows: exercises the row-pad / tail-slice path
    x2 = jax.random.normal(jax.random.PRNGKey(1), (5, 7, input_dim),
                           dtype=jnp.float32)
    out2 = jax.block_until_ready(embed_fn(x2, iteration))
    ref2 = _reference_embed(np.asarray(x2), iteration, input_dim, max_freq_log2,
                            N_freqs, N_anneal, N_anneal_min_freq,
                            use_annealing, include_input)
    np.testing.assert_allclose(np.asarray(out2), ref2, rtol=1e-5, atol=1e-5)

    # explicit sin+cos variant (no phase-shift trick) also matches
    embed_exact, _ = make_embedder(
        input_dim, max_freq_log2, N_freqs,
        log_sampling=True, include_input=include_input,
        N_anneal=N_anneal, N_anneal_min_freq=N_anneal_min_freq,
        use_annealing=use_annealing, cos_via_phase_shift=False)
    out3 = jax.block_until_ready(embed_exact(x, iteration))
    np.testing.assert_allclose(np.asarray(out3), ref, rtol=1e-5, atol=1e-5)

    print("KERNEL_OK")
</pallas_src>

<mosaic_0001>
module attributes {stable_mosaic.version = 11 : i64} {
  func.func @kernel_phase(%arg0: i32, %arg1: memref<4x36xf32, #tpu.memory_space<vmem>>, %arg2: memref<8x36xf32, #tpu.memory_space<vmem>>, %arg3: memref<8x36xf32, #tpu.memory_space<vmem>>) attributes {dimension_semantics = [#tpu.dimension_semantics<parallel>], iteration_bounds = array<i64: 2>, scalar_prefetch = 0 : i64, scratch_operands = 0 : i64, tpu.core_type = #tpu.core_type<tc>, window_params = [{pipeline_mode = #tpu.pipeline_mode<synchronous>, transform_indices = @transform_0, window_bounds = array<i64: 4, 36>}, {transform_indices = @transform_1, window_bounds = array<i64: 8, 36>}, {transform_indices = @transform_2, window_bounds = array<i64: 8, 36>}]} {
    %c0 = arith.constant 0 : index
    %c0_0 = arith.constant 0 : index
    %0 = vector.load %arg2[%c0, %c0_0] : memref<8x36xf32, #tpu.memory_space<vmem>>, vector<8x36xf32>
    %c0_1 = arith.constant 0 : index
    %c0_2 = arith.constant 0 : index
    %1 = vector.load %arg1[%c0_1, %c0_2] : memref<4x36xf32, #tpu.memory_space<vmem>>, vector<1x36xf32>
    %2 = vector.broadcast %1 : vector<1x36xf32> to vector<8x36xf32>
    %3 = arith.mulf %0, %2 : vector<8x36xf32>
    %c1 = arith.constant 1 : index
    %c0_3 = arith.constant 0 : index
    %4 = vector.load %arg1[%c1, %c0_3] : memref<4x36xf32, #tpu.memory_space<vmem>>, vector<1x36xf32>
    %5 = vector.broadcast %4 : vector<1x36xf32> to vector<8x36xf32>
    %6 = arith.addf %3, %5 : vector<8x36xf32>
    %7 = math.sin %6 : vector<8x36xf32>
    %c3 = arith.constant 3 : index
    %c0_4 = arith.constant 0 : index
    %8 = vector.load %arg1[%c3, %c0_4] : memref<4x36xf32, #tpu.memory_space<vmem>>, vector<1x36xf32>
    %9 = vector.broadcast %8 : vector<1x36xf32> to vector<8x36xf32>
    %10 = arith.mulf %7, %9 : vector<8x36xf32>
    %c2 = arith.constant 2 : index
    %c0_5 = arith.constant 0 : index
    %11 = vector.load %arg1[%c2, %c0_5] : memref<4x36xf32, #tpu.memory_space<vmem>>, vector<1x36xf32>
    %12 = vector.broadcast %11 : vector<1x36xf32> to vector<8x36xf32>
    %13 = arith.mulf %3, %12 : vector<8x36xf32>
    %14 = arith.addf %10, %13 : vector<8x36xf32>
    %c0_6 = arith.constant 0 : index
    %c0_7 = arith.constant 0 : index
    %15 = vector.load %arg3[%c0_6, %c0_7] : memref<8x36xf32, #tpu.memory_space<vmem>>, vector<8x36xf32>
    tpu.vector_store %arg3[%c0_6, %c0_7], %14 {strides = array<i32>} : memref<8x36xf32, #tpu.memory_space<vmem>>, vector<8x36xf32>,
    return
  }
  func.func @transform_0(%arg0: i32) -> (i32, i32) {
    %c0_i32 = arith.constant 0 : i32
    %c0_i32_0 = arith.constant 0 : i32
    %c0_i32_1 = arith.constant 0 : i32
    return %c0_i32, %c0_i32_0 : i32, i32
  }
  func.func @transform_1(%arg0: i32) -> (i32, i32) {
    %c0_i32 = arith.constant 0 : i32
    %c0_i32_0 = arith.constant 0 : i32
    return %arg0, %c0_i32 : i32, i32
  }
  func.func @transform_2(%arg0: i32) -> (i32, i32) {
    %c0_i32 = arith.constant 0 : i32
    %c0_i32_0 = arith.constant 0 : i32
    return %arg0, %c0_i32 : i32, i32
  }
}

</mosaic_0001>

<bundles_post_ra>
// kernel: tpu_custom_call.1
= control target key start
LH: loop header
LB: loop body
LE: loop exit
PB: predicated region body
PF: predicated region fallthrough
CT: control target
= control target key end

     0   :  { %7 = vsyncpa [#allocation3], 0  ;;  %s877_s0 = inlined_call_operand.hbm [shape: f32[4,36], index: 0, kind: input, shape index: {}]   ;;  %s878_s1 = inlined_call_operand.hbm [shape: f32[16,36], index: 1, kind: input, shape index: {}]   ;;  %s879_s2 = inlined_call_operand.hbm [shape: f32[16,36], index: 2, kind: output, shape index: {}]  }
   0x1   :  { %8 = vsyncpa [#allocation6], 0 }
   0x2   :  { %10 = vsyncpa [#allocation6 + $0x1], 0 }
   0x3   :  { %11 = vsyncpa [#allocation4], 0 }
   0x4   :  { %13 = vsyncpa [#allocation4 + $0x1], 0  ;;  %s685_s9 = smov 0   ;;  %s687_s10 = smov 0  }
   0x5   :  { %s689_s11 = smov 0   ;;  %s691_s12 = smov 0  }
   0x6 LB: > { %s706_s13 = sadd.s32 4294967295, %s660_s12   ;;  %s445_s14 = sadd.s32 4294967294, %s660_s12   ;;  %s660_s12 = sphi %s691_s12, %s889_s12   ;;  %s656_s11 = sphi %s689_s11, %s888_s11   ;;  %s652_s10 = sphi %s687_s10, %s887_s10   ;;  %s648_s9 = sphi %s685_s9, %s886_s9  }
   0x7   : > { %p60_p0 = scmp.ne.s32.totalorder %s652_s10, %s648_s9  ;;  %p61_p1 = scmp.eq.s32.totalorder %s706_s13, 0 }
   0x8   : > { %p84_p2 = scmp.eq.s32.totalorder %s706_s13, 1  ;;  %p90_p3 = scmp.eq.s32.totalorder %s445_s14, 1 }
   0x9   : > { %p715_p4 = por %p61_p1, %p60_p0  ;;  %p446_p5 = scmp.ge.s32.totalorder %s660_s12, 1 }
   0xa   : > { %p720_p6 = por %p90_p3, %p60_p0  ;;  %p97_p7 = scmp.lt.s32.totalorder %s660_s12, 3 }
   0xb   : > { %s109_s19 = sshll.u32 %s877_s0, 4  ;;  %s662_s21 = smov [#allocation2]   ;;  %s110_s19 = int_to_ptr.hbm [resolvable:$true] %s109_s19 }
   0xc   : > { %p728_p8 = pnand %p446_p5, %p97_p7  ;;  %s111_s22 = sshll.u32 %s662_s21, 4  ;;  %s112_s22 = int_to_ptr.vmem [resolvable:$true] %s111_s22 }
   0xd   : > { %s738_s23 = sadd.s32 1, %s660_s12   ;;  %s47_s24 = sadd.s32 1, %s656_s11 }
   0xe   : > { %p470_p10 = pneg %p728_p8  ;;  %s44_s25 = ssub.s32 %s660_s12, %s738_s23 }
   0xf   : > { %p45_p12 = scmp.eq.s32.totalorder %s44_s25, 0  ;;  %p54_p13 = scmp.ne.s32.totalorder %s656_s11, %s652_s10 }
  0x10   : > { %p471_p11 = pnand %p470_p10, %p61_p1  ;;  %p55_p0 = scmp.eq.s32.totalorder %s660_s12, 0 }
  0x11   : > { %s747_s26 = scalar_select %p45_p12, %s656_s11, %s47_s24  }
  0x12   : > { %473 = dma.hbm_to_vmem [thread:$0]  (!%p471_p11), %s110_s19, 64, %s112_s22, [#allocation3]  }
  0x13   : > { %p751_p3 = por %p84_p2, %p54_p13  ;;  %p483_p5 = scmp.lt.s32.totalorder %s660_s12, 2 }
  0x14   : > { %s122_s28 = sand.u32 1, %s656_s11   ;;  %s450_s29 = sshll.u32 %s660_s12, 3 }
  0x15   : > { %p56_p7 = por %p55_p0, %p54_p13  ;;  %s449_s30 = sshll.u32 %s122_s28, 3 }
  0x16   : > { %s130_s5 = scalar_lea.hbm %s878_s1, %s450_s29  ;;  %s126_s7 = scalar_lea.vmem [#allocation5], %s449_s30 }
  0x17   : > { %s132_s6 = sshll.u32 %s130_s5, 4  ;;  %s134_s8 = sshll.u32 %s126_s7, 4  ;;  %s133_s6 = int_to_ptr.hbm [resolvable:$true] %s132_s6  ;;  %s135_s8 = int_to_ptr.vmem [resolvable:$true] %s134_s8 }
  0x18   : > { %p761_p10 = pnand %p483_p5, %p56_p7  ;;  %s123_s17 = scalar_lea.sflag [#allocation6], %s122_s28 }
  0x19   : > { %s560_s18 = sshra.s32 %s133_s6, 4  ;;  %s567_s24 = scalar_lea.hbm %s878_s1, 16  ;;  %s561_s18 = int_to_ptr.hbm [resolvable:$true] %s560_s18 }
  0x1a   : > { %s562_s19 = scalar_lea.hbm %s561_s18, 8  ;;  %p564_p11 = pneg %p761_p10 }
  0x1b   : > { %p563_p2 = scmp.ne.s32.totalorder %s561_s18, %s562_s19  ;;  %p568_p0 = scmp.lt.s32.totalorder %s561_s18, %s878_s1 }
  0x1c   : > { %p569_p5 = scmp.lt.s32.totalorder %s567_s24, %s562_s19 }
  0x1d   : > { %p565_p12 = pnand %p564_p11, %p563_p2 }
  0x1e   : > { %p570_p7 = por %p569_p5, %p568_p0 }
  0x1f   : > { %p566_p13 = pneg %p565_p12 }
  0x21   : > { %p571_p9 = pnand %p570_p7, %p566_p13 }
  0x23   : > { %574 = shalt.err (!%p571_p9)
}
  0x24   : > { %477 = dma.hbm_to_vmem [thread:$0]  (!%p761_p10), %s133_s6, 128, %s135_s8, %s123_s17  }
  0x25   : > { %143 = sbr.rel (%p728_p8) target bundleno = 155 (0x9b), region = 28 }
  0x2a   : > { %635 = dma.done.wait (%p61_p1), [#allocation3], 64  }
  0x2b   : > { %637 = vsyncadd (%p61_p1), [#allocation3], 4294967232  ;;  %s782_s28 = sand.u32 1, %s652_s10  }
  0x2c   : > { %s453_s30 = sshll.u32 %s782_s28, 3  ;;  %s151_s3 = scalar_lea.sflag [#allocation6], %s782_s28 }
  0x2d   : > { %s154_s4 = scalar_lea.vmem [#allocation5], %s453_s30 }
  0x2e   : > { %639 = dma.done.wait (%p715_p4), %s151_s3, 128  }
  0x2f   : > { %641 = vsyncadd (%p715_p4), %s151_s3, 4294967168  ;;  %v176_v0 = vld [vmem:[%s154_s4] sm:$0xff]  ;;  %v526_v1 = vld [vmem:[#allocation2] ss:$0 sm:$0xff]  ;;  %v663_v16 = vmov 683565275  }
  0x30   : > { %v527_v2 = vld [vmem:[#allocation2 + $0x1] ss:$0 sm:$0xff]  ;;  %v792_v3 = vmul.f32 %v526_v1, %v176_v0  ;;  %v664_v18 = vmov 2475754826   ;;  %v665_v20 = vmov 2131351028  }
  0x31   : > { %v666_v22 = vmov 2102212464   ;;  %v667_v24 = vmov 920167782   ;;  %v668_v30 = vmov 1326507024  }
  0x32   : > { %v795_v4 = vadd.f32 %v527_v2, %v792_v3  ;;  %s459_s15 = sshll.u32 %s706_s13, 3  ;;  %s175_s13 = scalar_lea.vmem [#allocation7], %s453_s30 }
  0x33   : > { %s358_s6 = scalar_lea.hbm %s879_s2, %s459_s15  ;;  %s360_s7 = sshll.u32 %s175_s13, 4  ;;  %s361_s7 = int_to_ptr.vmem [resolvable:$true] %s360_s7 }
  0x34   : > { %v186_v5 = vand.u32 2139095040, %v795_v4  ;;  %v183_v7 = vand.u32 2147483647, %v795_v4  ;;  %vm185_vm12 = vcmp.lt.s32.totalorder %v795_v4, 0  ;;  %s362_s8 = sshll.u32 %s358_s6, 4  ;;  %s348_s14 = scalar_lea.sflag [#allocation4], %s782_s28  ;;  %s363_s8 = int_to_ptr.hbm [resolvable:$true] %s362_s8 }
  0x35   : > { %s604_s17 = sshra.s32 %s363_s8, 4  ;;  %s610_s22 = scalar_lea.hbm %s879_s2, 16  ;;  %s605_s17 = int_to_ptr.hbm [resolvable:$true] %s604_s17 }
  0x36   : > { %v187_v6 = vshrl.u32 %v186_v5, 23  ;;  %v190_v10 = vand.u32 8388607, %v183_v7  ;;  %vm184_vm13 = vcmp.le.f32.partialorder %v183_v7, 0.7853982  ;;  %s606_s18 = scalar_lea.hbm %s605_s17, 8  ;;  %p611_p9 = scmp.lt.s32.totalorder %s605_s17, %s879_s2 }
  0x37   : > { %p607_p1 = scmp.ne.s32.totalorder %s605_s17, %s606_s18  ;;  %p612_p10 = scmp.lt.s32.totalorder %s610_s22, %s606_s18 }
  0x38   : > { %v455_v8 = vadd.s32 4294967169, %v187_v6  ;;  %v191_v13 = vor.u32 8388608, %v190_v10  ;;  %v669_v6 = vmov 0  }
  0x39   : > { %p608_p4 = pnand %p607_p1, %p751_p3  ;;  %p613_p2 = por %p612_p10, %p611_p9 }
  0x3a   : > { %v193_v9 = vadd.s32 1, %v455_v8  ;;  %v804_v32 = vshll.u32 %v191_v13, 8 }
  0x3b   : > { %p609_p8 = pneg %p608_p4 }
  0x3c   : > { %vm194_vm0 = vcmp.gt.s32.totalorder %v193_v9, 0  ;;  %v232_v44 = vand.u32 65535, %v804_v32  ;;  %v233_v45 = vshrl.u32 %v804_v32, 16 }
  0x3d   : > { %v195_v11 = vsel %vm194_vm0, %v193_v9, 0  ;;  %p614_p11 = pnand %p613_p2, %p609_p8 }
  0x3e   : > { %v197_v12 = vand.u32 31, %v195_v11  ;;  %v801_v14 = vshrl.u32 %v195_v11, 5 }
  0x40   : > { %v198_v15 = vsub.s32 32, %v197_v12  ;;  %v200_v17 = vshll.u32 %v663_v16, %v197_v12  ;;  %v203_v19 = vshll.u32 %v664_v18, %v197_v12  ;;  %v206_v21 = vshll.u32 %v665_v20, %v197_v12 }
  0x41   : > { %v209_v23 = vshll.u32 %v666_v22, %v197_v12  ;;  %v212_v25 = vshll.u32 %v667_v24, %v197_v12  ;;  %vm215_vm1 = vcmp.lt.s32.totalorder %v801_v14, 1  ;;  %vm218_vm2 = vcmp.lt.s32.totalorder %v801_v14, 4 }
  0x42   : > { %v201_v26 = vshrl.u32 %v664_v18, %v198_v15  ;;  %v204_v27 = vshrl.u32 %v665_v20, %v198_v15  ;;  %v207_v28 = vshrl.u32 %v666_v22, %v198_v15  ;;  %v210_v29 = vshrl.u32 %v667_v24, %v198_v15 }
  0x43   : > { %v213_v31 = vshrl.u32 %v668_v30, %v198_v15  ;;  %vm217_vm3 = vcmp.lt.s32.totalorder %v801_v14, 3  ;;  %vm216_vm4 = vcmp.lt.s32.totalorder %v801_v14, 2  ;;  %v199_v52 = vshrl.u32 %v663_v16, %v198_v15 }
  0x44   : > { %v202_v33 = vor.u32 %v201_v26, %v200_v17  ;;  %v205_v34 = vor.u32 %v204_v27, %v203_v19  ;;  %v208_v35 = vor.u32 %v207_v28, %v206_v21  ;;  %v211_v36 = vor.u32 %v210_v29, %v209_v23 }
  0x45   : > { %v214_v37 = vor.u32 %v213_v31, %v212_v25 }
  0x46   : > { %v223_v38 = vsel %vm215_vm1, %v202_v33, %v205_v34  ;;  %v227_v39 = vsel %vm215_vm1, %v205_v34, %v208_v35  ;;  %v224_v40 = vsel %vm218_vm2, %v211_v36, 920167782  ;;  %v219_v1 = vsel %vm215_vm1, %v199_v52, %v202_v33 }
  0x47   : > { %v228_v41 = vsel %vm218_vm2, %v214_v37, 1326507024  ;;  %v225_v42 = vsel %vm217_vm3, %v208_v35, %v224_v40  ;;  %v220_v5 = vsel %vm218_vm2, %v208_v35, 2102212464  ;;  %vm326_vm1 = vweird.f32 %v795_v4 }
  0x48   : > { %v229_v43 = vsel %vm217_vm3, %v211_v36, %v228_v41  ;;  %v226_v46 = vsel %vm216_vm4, %v223_v38, %v225_v42  ;;  %v221_v17 = vsel %vm217_vm3, %v205_v34, %v220_v5  ;;  %vm345_vm2 = vcmask 293888  }
  0x49   : > { %v230_v47 = vsel %vm216_vm4, %v227_v39, %v229_v43  ;;  %v256_v50 = vand.u32 65535, %v226_v46  ;;  %v257_v51 = vshrl.u32 %v226_v46, 16  ;;  %v222_v25 = vsel %vm216_vm4, %v219_v1, %v221_v17 }
  0x4a   : > { %v234_v48 = vand.u32 65535, %v230_v47  ;;  %v235_v49 = vshrl.u32 %v230_v47, 16  ;;  %v276_v29 = vmul.u32 %v804_v32, %v222_v25 }
  0x4b   : > { %v258_v56 = vmul.u32 %v256_v50, %v232_v44  ;;  %v259_v57 = vmul.u32 %v257_v51, %v232_v44  ;;  %v260_v58 = vmul.u32 %v256_v50, %v233_v45  ;;  %v261_v62 = vmul.u32 %v257_v51, %v233_v45 }
  0x4c   : > { %v236_v53 = vmul.u32 %v234_v48, %v232_v44  ;;  %v237_v54 = vmul.u32 %v235_v49, %v232_v44  ;;  %v238_v55 = vmul.u32 %v234_v48, %v233_v45  ;;  %v239_v59 = vmul.u32 %v235_v49, %v233_v45 }
  0x4d   : > { %v262_v63 = vshll.u32 %v259_v57, 16  ;;  %v264_v0 = vshll.u32 %v260_v58, 16  ;;  %v263_v15 = vshrl.u32 %v259_v57, 16  ;;  %v265_v21 = vshrl.u32 %v260_v58, 16 }
  0x4e   : > { %v240_v60 = vshll.u32 %v237_v54, 16  ;;  %v242_v61 = vshll.u32 %v238_v55, 16  ;;  %v241_v10 = vshrl.u32 %v237_v54, 16  ;;  %v243_v18 = vshrl.u32 %v238_v55, 16 }
  0x4f   : > { %vm266_vm6 = vc.u32 %v258_v56, %v262_v63  ;;  %v268_v9 = vadd.s32 %v262_v63, %v258_v56 }
  0x50   : > { %vm244_vm5 = vc.u32 %v236_v53, %v240_v60  ;;  %v246_v2 = vadd.s32 %v240_v60, %v236_v53  ;;  %v267_v12 = vsel %vm266_vm6, 1, %v669_v6 }
  0x51   : > { %v245_v8 = vsel %vm244_vm5, 1, %v669_v6  ;;  %v269_v16 = vadd.s32 %v267_v12, %v261_v62  ;;  %vm270_vm8 = vc.u32 %v268_v9, %v264_v0  ;;  %v272_v24 = vadd.s32 %v268_v9, %v264_v0 }
  0x52   : > { %v247_v11 = vadd.s32 %v245_v8, %v239_v59  ;;  %vm248_vm7 = vc.u32 %v246_v2, %v242_v61  ;;  %v271_v20 = vsel %vm270_vm8, 1, %v669_v6 }
  0x53   : > { %v249_v13 = vsel %vm248_vm7, 1, %v669_v6  ;;  %v273_v22 = vadd.s32 %v271_v20, %v269_v16 }
  0x54   : > { %v251_v19 = vadd.s32 %v249_v13, %v247_v11 }
  0x55   : > { %v274_v26 = vadd.s32 %v273_v22, %v263_v15  ;;  %v529_v15 = vld [vmem:[#allocation2 + $0x2] ss:$0 sm:$0xff] }
  0x56   : > { %v252_v23 = vadd.s32 %v251_v19, %v241_v10 }
  0x57   : > { %v275_v28 = vadd.s32 %v274_v26, %v265_v21  ;;  %v343_v21 = vmul.f32 %v529_v15, %v792_v3 }
  0x58   : > { %v253_v27 = vadd.s32 %v252_v23, %v243_v18  ;;  %v528_v18 = vld [vmem:[#allocation2 + $0x3] ss:$0 sm:$0xff] }
  0x59   : > { %v279_v30 = vadd.s32 1, %v275_v28 }
  0x5a   : > { %vm278_vm9 = vc.u32 %v253_v27, %v272_v24  ;;  %v277_v14 = vadd.s32 %v272_v24, %v253_v27 }
  0x5b   : > { %v280_v31 = vsel %vm278_vm9, %v279_v30, %v275_v28 }
  0x5c   : > { %v281_v33 = vadd.s32 %v280_v31, %v276_v29 }
  0x5e   : > { %v282_v34 = vadd.s32 536870912, %v281_v33 }
  0x60   : > { %v283_v35 = vshrl.u32 %v282_v34, 30 }
  0x62   : > { %v284_v36 = vshll.u32 %v283_v35, 30  ;;  %v307_v53 = vsub.s32 4, %v283_v35 }
  0x64   : > { %v285_v37 = vsub.s32 %v281_v33, %v284_v36  ;;  %v308_v56 = vsel %vm185_vm12, %v307_v53, %v283_v35 }
  0x65   : > { %v310_v59 = vsel %vm184_vm13, 0, %v308_v56 }
  0x66   : > { %vm286_vm10 = vcmp.lt.s32.totalorder %v285_v37, 0  ;;  %v287_v38 = vsub.s32 0, %v285_v37  ;;  %v327_v0 = vadd.s32 3, %v310_v59 }
  0x68   : > { %v288_v39 = vsel %vm286_vm10, %v287_v38, %v285_v37  ;;  %v328_v8 = vand.u32 3, %v327_v0 }
  0x69   : > { %v289_v40 = vclz %v288_v39 }
  0x6a   : > { %vm333_vm14 = vcmp.eq.s32.totalorder %v328_v8, 2  ;;  %vm330_vm15 = vcmp.eq.s32.totalorder %v328_v8, 0  ;;  %vm329_vm0 = vcmp.lt.s32.totalorder %v328_v8, 2 }
  0x6b   : > { %v456_v41 = vadd.s32 4294967294, %v289_v40 }
  0x6d   : > { %vm457_vm11 = vcmp.lt.s32.totalorder %v456_v41, 0 }
  0x6e   : > { %v292_v42 = vsel %vm457_vm11, 0, %v456_v41 }
  0x6f   : > { %v293_v43 = vsub.s32 32, %v292_v42  ;;  %v294_v44 = vshll.u32 %v285_v37, %v292_v42  ;;  %v297_v45 = vsub.s32 4294967266, %v292_v42 }
  0x71   : > { %v295_v32 = vshrl.u32 %v277_v14, %v293_v43  ;;  %v298_v46 = vadd.s32 127, %v297_v45 }
  0x73   : > { %v296_v47 = vor.u32 %v295_v32, %v294_v44  ;;  %v299_v48 = vshll.u32 %v298_v46, 23 }
  0x75   : > { %v300_v49 = vor.u32 4788187, %v299_v48  ;;  %v303_v50 = vcvt.s32.f32 %v296_v47 }
  0x77   : > { %v301_v51 = vand.u32 2147483647, %v300_v49 }
  0x79   : > { %v304_v52 = vmul.f32 %v303_v50, %v301_v51 }
  0x7b   : > { %v305_v54 = vxor.u32 2147483648, %v304_v52 }
  0x7d   : > { %v306_v55 = vsel %vm185_vm12, %v305_v54, %v304_v52 }
  0x7e   : > { %v309_v57 = vsel %vm184_vm13, %v795_v4, %v306_v55 }
  0x7f   : > { %v311_v58 = vmul.f32 %v309_v57, %v309_v57 }
  0x81   : > { %v312_v60 = vmul.f32 -0.001358992, %v311_v58  ;;  %v319_v61 = vmul.f32 -0.00019511016, %v311_v58 }
  0x83   : > { %v313_v62 = vadd.f32 0.041655596, %v312_v60  ;;  %v320_v63 = vadd.f32 0.008332121, %v319_v61 }
  0x85   : > { %v314_v1 = vmul.f32 %v313_v62, %v311_v58  ;;  %v321_v2 = vmul.f32 %v320_v63, %v311_v58 }
  0x87   : > { %v315_v5 = vadd.f32 -0.4999988, %v314_v1  ;;  %v322_v6 = vadd.f32 -0.16666654, %v321_v2 }
  0x89   : > { %v316_v9 = vmul.f32 %v315_v5, %v311_v58  ;;  %v323_v7 = vmul.f32 %v322_v6, %v311_v58 }
  0x8b   : > { %v317_v10 = vadd.f32 1.0, %v316_v9  ;;  %v324_v11 = vadd.f32 1.0, %v323_v7 }
  0x8d   : > { %v325_v12 = vmul.f32 %v324_v11, %v309_v57  ;;  %v334_v13 = vxor.u32 2147483648, %v317_v10 }
  0x8f   : > { %v331_v16 = vxor.u32 2147483648, %v325_v12  ;;  %v335_v17 = vsel %vm333_vm14, %v334_v13, %v325_v12 }
  0x91   : > { %v332_v19 = vsel %vm330_vm15, %v317_v10, %v331_v16 }
  0x92   : > { %v336_v20 = vsel %vm329_vm0, %v332_v19, %v335_v17 }
  0x93   : > { %v337_v22 = vsel %vm326_vm1, nan, %v336_v20 }
  0x94   : > { %v340_v23 = vmul.f32 %v528_v18, %v337_v22 }
  0x96   : > { %v344_v24 = vadd.f32 %v343_v21, %v340_v23 }
  0x98   : > { %346 = vst.msk [vmem:[%s175_s13] sm:$0xff] %vm345_vm2, %v344_v24 }
  0x99   : > { %617 = shalt.err (!%p614_p11)
}
  0x9a   : > { %468 = dma.vmem_to_hbm [thread:$0]  (%p751_p3), %s361_s7, 128, %s363_s8, %s348_s14  }
  0x9b PF: > { %s374_s29 = sand.u32 1, %s648_s9   ;;  %p885_p12 = scmp.ge.s32.totalorder %s660_s12, 2 }
  0x9c   : > { %s375_s28 = scalar_lea.sflag [#allocation4], %s374_s29 }
  0x9d   : > { %p479_p13 = pnand %p885_p12, %p720_p6 }
  0x9f   : > { %p480_p0 = pneg %p479_p13 }
  0xa1   : > { %643 = dma.done.wait (%p480_p0), %s375_s28, 128  }
  0xa2   : > { %645 = vsyncadd (%p480_p0), %s375_s28, 4294967168  ;;  %p16_p5 = scmp.ge.s32.totalorder %s738_s23, 4   ;;  %s886_s9 = smov %s652_s10 }
  0xa3   : > { %s887_s10 = smov %s656_s11  ;;  %s888_s11 = smov %s747_s26 }
  0xa4   : > { %s889_s12 = smov %s738_s23  ;;  %18 = sbr.rel (!%p16_p5) target bundleno = 6 (0x6), region = 78 }
  0xa9   :  { %381 = vsyncpa [#allocation3], 1 }
  0xaa   :  { %383 = vsyncpa [#allocation3 + $0x1], 1 }
  0xab   :  { %384 = vsyncpa [#allocation6], 1 }
  0xac   :  { %386 = vsyncpa [#allocation6 + $0x1], 1 }
  0xad   :  { %387 = vsyncpa [#allocation4], 1 }
  0xae   :  { %389 = vsyncpa [#allocation4 + $0x1], 1 }

</bundles_post_ra>
